<compile_context>
chip_gen: v5e
topology: v5e:2x2
jax: 0.10.0
libtpu: 0.0.40
codegen_flags: <defaults>
</compile_context>

<pallas_src>
import functools

import jax
import jax.numpy as jnp
from jax.experimental import pallas as pl
from jax.experimental.pallas import tpu as pltpu

D_MODEL = 32
N_ATOMS = 120          # logical number of classes (atomic numbers)
N_PAD = 128            # lane-dense padded class dimension used for compute
ROW_TILE = 4096        # rows of the flattened (N, d_model) matrix per grid step
NEG_BIG = -1e30        # large finite negative bias for padded softmax columns


def _round_up(x, m):
    return (x + m - 1) // m * m


def atomic_lm_kernel(x_ref, w_ref, b_ref, o_ref):
    # x_ref: (rt, d_model)
    # w_ref: (d_model, N_PAD)   fused W1^T @ W2^T (zeros in padded columns)
    # b_ref: (1, N_PAD)         fused bias, NEG_BIG in padded columns
    # o_ref: (rt, N_ATOMS)
    x = x_ref[...]
    logits = jnp.dot(x, w_ref[...], preferred_element_type=jnp.float32) + b_ref[...]
    # Numerically stable softmax along the last axis. Padded columns carry a
    # -1e30 bias so exp underflows to exactly 0 and contributes no mass.
    m = jnp.max(logits, axis=-1, keepdims=True)
    e = jnp.exp(logits - m)
    # Row-sum on the MXU (128 -> 1 contraction) keeps the XLU slot free; the
    # MXU is nearly idle here (K=32 main matmul).
    ones = jnp.ones((N_PAD, 1), jnp.float32)
    denom = jnp.dot(e, ones, preferred_element_type=jnp.float32)
    inv = 1.0 / denom                      # exact: rows sum to 1 to f32 precision
    o_ref[...] = (e[:, :N_ATOMS] * inv).astype(o_ref.dtype)


def fuse_params(w1_t, b1, w2_t, b2):
    """One-time fold of the two linears (weights in (in, out) layout).

    Returns w_fused: (d_model, 128), b_fused: (1, 128); padded columns get
    zero weights and NEG_BIG bias so they vanish under softmax."""
    w2_p = jnp.pad(w2_t, ((0, 0), (0, N_PAD - N_ATOMS)))                    # (d, 128)
    b2_p = jnp.pad(b2.reshape(1, -1), ((0, 0), (0, N_PAD - N_ATOMS)),
                   constant_values=NEG_BIG)                                  # (1, 128)
    w_fused = jnp.dot(w1_t, w2_p, preferred_element_type=jnp.float32)        # (d, 128)
    b_fused = jnp.dot(b1.reshape(1, -1), w2_p,
                      preferred_element_type=jnp.float32) + b2_p             # (1, 128)
    return w_fused, b_fused


@functools.partial(jax.jit, static_argnames=("row_tile",))
def atomic_lm(x, w_fused, b_fused, *, row_tile=ROW_TILE):
    """x: (batch, seq, d_model); fused params from fuse_params().

    Returns softmax probabilities of shape (batch, seq, 120)."""
    batch, seq, d_model = x.shape
    n_rows = batch * seq
    x2 = x.reshape(n_rows, d_model)

    # Row tile: as large as possible (amortize ~0.35us per-step overhead),
    # multiple of 8 sublanes, but prefer >= 2 grid steps so the "parallel"
    # row axis can shard across both v7x TensorCores.
    if n_rows <= 8:
        rt = n_rows
    else:
        rt = min(row_tile, _round_up(n_rows, 8))
        if pl.cdiv(n_rows, rt) < 2:
            rt = max(8, _round_up(pl.cdiv(n_rows, 2), 8))
    n_steps = pl.cdiv(n_rows, rt)

    cost = pl.CostEstimate(
        flops=2 * n_rows * d_model * N_PAD + 2 * n_rows * N_PAD,
        transcendentals=n_rows * N_PAD,
        bytes_accessed=n_rows * (d_model + N_ATOMS) * 4 + (d_model + 1) * N_PAD * 4,
    )

    out2 = pl.pallas_call(
        atomic_lm_kernel,
        out_shape=jax.ShapeDtypeStruct((n_rows, N_ATOMS), x.dtype),
        grid_spec=pltpu.PrefetchScalarGridSpec(
            num_scalar_prefetch=0,
            grid=(n_steps,),
            in_specs=[
                pl.BlockSpec((rt, d_model), lambda i: (i, 0)),    # x rows
                pl.BlockSpec((d_model, N_PAD), lambda i: (0, 0)),  # fused W (resident)
                pl.BlockSpec((1, N_PAD), lambda i: (0, 0)),        # fused bias
            ],
            # Last dim 120 == full array dim -> legal; no post-kernel slice copy.
            out_specs=pl.BlockSpec((rt, N_ATOMS), lambda i: (i, 0)),
        ),
        compiler_params=pltpu.CompilerParams(
            dimension_semantics=("parallel",),
        ),
        cost_estimate=cost,
    )(x2, w_fused, b_fused)

    return out2.reshape(batch, seq, N_ATOMS)


def reference(x, w1_t, b1, w2_t, b2):
    h = x @ w1_t + b1.reshape(1, -1)
    logits = h @ w2_t + b2.reshape(1, -1)
    return jax.nn.softmax(logits, axis=-1)


if __name__ == "__main__":
    key = jax.random.PRNGKey(0)
    k_x, k_w1, k_b1, k_w2, k_b2 = jax.random.split(key, 5)

    batch, seq = 2, 8
    x = jax.random.normal(k_x, (batch, seq, D_MODEL), dtype=jnp.float32)

    # Deterministic parameter init (PyTorch-like uniform fan-in scaling),
    # stored pre-transposed as (in_features, out_features).
    bound1 = 1.0 / (D_MODEL ** 0.5)
    w1_t = jax.random.uniform(k_w1, (D_MODEL, D_MODEL), jnp.float32, -bound1, bound1)
    b1 = jax.random.uniform(k_b1, (D_MODEL,), jnp.float32, -bound1, bound1)
    w2_t = jax.random.uniform(k_w2, (D_MODEL, N_ATOMS), jnp.float32, -bound1, bound1)
    b2 = jax.random.uniform(k_b2, (N_ATOMS,), jnp.float32, -bound1, bound1)

    # One-time parameter preprocessing (hoisted out of the per-call path).
    w_fused, b_fused = fuse_params(w1_t, b1, w2_t, b2)

    out = atomic_lm(x, w_fused, b_fused)
    out = jax.block_until_ready(out)

    ref = reference(x, w1_t, b1, w2_t, b2)
    assert out.shape == (batch, seq, N_ATOMS), out.shape
    # Tolerance covers trace-time W1@W2 fusion rounding vs the two-GEMM reference.
    assert jnp.allclose(out, ref, atol=2e-3, rtol=2e-3), "mismatch vs reference"
    # Exact normalization: softmax rows sum to 1 to f32 precision.
    assert jnp.allclose(jnp.sum(out, axis=-1), 1.0, atol=1e-4)

    print("KERNEL_OK")
</pallas_src>

<mosaic_0001>
module attributes {stable_mosaic.version = 11 : i64} {
  func.func @atomic_lm_kernel(%arg0: i32, %arg1: memref<8x32xf32, #tpu.memory_space<vmem>>, %arg2: memref<32x128xf32, #tpu.memory_space<vmem>>, %arg3: memref<1x128xf32, #tpu.memory_space<vmem>>, %arg4: memref<8x120xf32, #tpu.memory_space<vmem>>) attributes {dimension_semantics = [#tpu.dimension_semantics<parallel>], iteration_bounds = array<i64: 2>, scalar_prefetch = 0 : i64, scratch_operands = 0 : i64, tpu.core_type = #tpu.core_type<tc>, window_params = [{transform_indices = @transform_0, window_bounds = array<i64: 8, 32>}, {pipeline_mode = #tpu.pipeline_mode<synchronous>, transform_indices = @transform_1, window_bounds = array<i64: 32, 128>}, {pipeline_mode = #tpu.pipeline_mode<synchronous>, transform_indices = @transform_2, window_bounds = array<i64: 1, 128>}, {transform_indices = @transform_3, window_bounds = array<i64: 8, 120>}]} {
    %c0 = arith.constant 0 : index
    %c0_0 = arith.constant 0 : index
    %0 = vector.load %arg1[%c0, %c0_0] : memref<8x32xf32, #tpu.memory_space<vmem>>, vector<8x32xf32>
    %c0_1 = arith.constant 0 : index
    %c0_2 = arith.constant 0 : index
    %1 = vector.load %arg2[%c0_1, %c0_2] : memref<32x128xf32, #tpu.memory_space<vmem>>, vector<32x128xf32>
    %cst = arith.constant dense<0.000000e+00> : vector<8x128xf32>
    %2 = tpu.matmul %0, %1, %cst {dimension_numbers = #tpu.dot_dimension_numbers<[1], [0], [0], [1], [0, 0, 1, 1], [], []>} : vector<8x32xf32>, vector<32x128xf32>, vector<8x128xf32> -> vector<8x128xf32>
    %c0_3 = arith.constant 0 : index
    %c0_4 = arith.constant 0 : index
    %3 = vector.load %arg3[%c0_3, %c0_4] : memref<1x128xf32, #tpu.memory_space<vmem>>, vector<1x128xf32>
    %4 = vector.broadcast %3 : vector<1x128xf32> to vector<8x128xf32>
    %5 = arith.addf %2, %4 : vector<8x128xf32>
    %cst_5 = arith.constant dense<0xFF800000> : vector<8xf32>
    %6 = vector.multi_reduction <maximumf>, %5, %cst_5 [1] : vector<8x128xf32> to vector<8xf32>
    %7 = vector.shape_cast %6 : vector<8xf32> to vector<8x1xf32>
    %8 = vector.broadcast %7 : vector<8x1xf32> to vector<8x128xf32>
    %9 = arith.subf %5, %8 : vector<8x128xf32>
    %10 = math.exp %9 : vector<8x128xf32>
    %cst_6 = arith.constant 1.000000e+00 : f32
    %11 = vector.broadcast %cst_6 : f32 to vector<128x1xf32>
    %cst_7 = arith.constant dense<0.000000e+00> : vector<8x1xf32>
    %12 = tpu.matmul %10, %11, %cst_7 {dimension_numbers = #tpu.dot_dimension_numbers<[1], [0], [0], [1], [0, 0, 1, 1], [], []>} : vector<8x128xf32>, vector<128x1xf32>, vector<8x1xf32> -> vector<8x1xf32>
    %cst_8 = arith.constant 1.000000e+00 : f32
    %13 = vector.broadcast %cst_8 : f32 to vector<8x1xf32>
    %14 = arith.divf %13, %12 : vector<8x1xf32>
    %15 = vector.extract_strided_slice %10 {offsets = [0, 0], sizes = [8, 120], strides = [1, 1]} : vector<8x128xf32> to vector<8x120xf32>
    %16 = vector.broadcast %14 : vector<8x1xf32> to vector<8x120xf32>
    %17 = arith.mulf %15, %16 : vector<8x120xf32>
    %c0_9 = arith.constant 0 : index
    %c0_10 = arith.constant 0 : index
    %18 = vector.load %arg4[%c0_9, %c0_10] : memref<8x120xf32, #tpu.memory_space<vmem>>, vector<8x120xf32>
    tpu.vector_store %arg4[%c0_9, %c0_10], %17 {strides = array<i32>} : memref<8x120xf32, #tpu.memory_space<vmem>>, vector<8x120xf32>,
    return
  }
  func.func @transform_0(%arg0: i32) -> (i32, i32) {
    %c0_i32 = arith.constant 0 : i32
    %c0_i32_0 = arith.constant 0 : i32
    return %arg0, %c0_i32 : i32, i32
  }
  func.func @transform_1(%arg0: i32) -> (i32, i32) {
    %c0_i32 = arith.constant 0 : i32
    %c0_i32_0 = arith.constant 0 : i32
    %c0_i32_1 = arith.constant 0 : i32
    return %c0_i32, %c0_i32_0 : i32, i32
  }
  func.func @transform_2(%arg0: i32) -> (i32, i32) {
    %c0_i32 = arith.constant 0 : i32
    %c0_i32_0 = arith.constant 0 : i32
    %c0_i32_1 = arith.constant 0 : i32
    return %c0_i32, %c0_i32_0 : i32, i32
  }
  func.func @transform_3(%arg0: i32) -> (i32, i32) {
    %c0_i32 = arith.constant 0 : i32
    %c0_i32_0 = arith.constant 0 : i32
    return %arg0, %c0_i32 : i32, i32
  }
}

</mosaic_0001>

<bundles_post_ra>
// kernel: atomic_lm.1
= control target key start
LH: loop header
LB: loop body
LE: loop exit
PB: predicated region body
PF: predicated region fallthrough
CT: control target
= control target key end

     0   :  { %8 = vsyncpa [#allocation3], 0  ;;  %s764_s0 = inlined_call_operand.hbm [shape: f32[16,32], index: 0, kind: input, shape index: {}]   ;;  %s765_s1 = inlined_call_operand.hbm [shape: f32[32,128], index: 1, kind: input, shape index: {}]   ;;  %s766_s2 = inlined_call_operand.vmem [shape: f32[1,128], index: 2, kind: input, shape index: {}]   ;;  %s767_s3 = inlined_call_operand.hbm [shape: f32[16,120], index: 3, kind: output, shape index: {}]  }
   0x1   :  { %10 = vsyncpa [#allocation3 + $0x1], 0 }
   0x2   :  { %11 = vsyncpa [#allocation6], 0 }
   0x3   :  { %12 = vsyncpa [#allocation4], 0 }
   0x4   :  { %14 = vsyncpa [#allocation4 + $0x1], 0  ;;  %s621_s12 = smov 0   ;;  %s623_s13 = smov 0  }
   0x5   :  { %s625_s14 = smov 0   ;;  %s627_s15 = smov 0  }
   0x6 LB: > { %s130_s18 = sshll.u32 %s765_s1, 4  ;;  %s645_s19 = sadd.s32 4294967295, %s594_s15   ;;  %s594_s15 = sphi %s627_s15, %s777_s15   ;;  %s590_s14 = sphi %s625_s14, %s776_s14   ;;  %s586_s13 = sphi %s623_s13, %s775_s13   ;;  %s582_s12 = sphi %s621_s12, %s774_s12   ;;  %s131_s18 = int_to_ptr.hbm [resolvable:$true] %s130_s18 }
   0x7   : > { %p383_p0 = scmp.ge.s32.totalorder %s594_s15, 1  ;;  %p41_p1 = scmp.eq.s32.totalorder %s645_s19, 0 }
   0x8   : > { %p119_p2 = scmp.lt.s32.totalorder %s594_s15, 3  ;;  %s596_s21 = smov [#allocation5]  }
   0x9   : > { %s132_s22 = sshll.u32 %s596_s21, 4  ;;  %s597_s23 = smov 128   ;;  %s133_s22 = int_to_ptr.vmem [resolvable:$true] %s132_s22 }
   0xa   : > { %p650_p3 = pnand %p383_p0, %p119_p2  ;;  %s598_s24 = smov 8  }
   0xb   : > { %s382_s25 = sadd.s32 4294967294, %s594_s15   ;;  %s661_s26 = sadd.s32 1, %s594_s15  }
   0xc   : > { %p405_p4 = pneg %p650_p3  ;;  %s27_s27 = sadd.s32 1, %s590_s14 }
   0xd   : > { %s24_s28 = ssub.s32 %s594_s15, %s661_s26  ;;  %p34_p7 = scmp.ne.s32.totalorder %s590_s14, %s586_s13 }
   0xe   : > { %p406_p6 = pnand %p405_p4, %p41_p1  ;;  %p25_p8 = scmp.eq.s32.totalorder %s24_s28, 0 }
   0xf   : > { %p35_p9 = scmp.eq.s32.totalorder %s594_s15, 0  ;;  %p40_p10 = scmp.ne.s32.totalorder %s586_s13, %s582_s12 }
  0x10   : > { %408 = dma.hbm_to_vmem [thread:$0]  (!%p406_p6), %s131_s18, 512, %s133_s22, [#allocation6], %s597_s23, %s597_s23, %s598_s24  }
  0x11   : > { %p106_p11 = scmp.eq.s32.totalorder %s645_s19, 1  ;;  %p677_p12 = por %p41_p1, %p40_p10 }
  0x12   : > { %s673_s29 = scalar_select %p25_p8, %s590_s14, %s27_s27  }
  0x13   : > { %p681_p13 = por %p106_p11, %p34_p7  ;;  %p112_p0 = scmp.eq.s32.totalorder %s382_s25, 1 }
  0x14   : > { %p36_p2 = por %p35_p9, %p34_p7  ;;  %s149_s5 = sand.u32 1, %s590_s14  }
  0x15   : > { %p686_p4 = por %p112_p0, %p40_p10  ;;  %p418_p6 = scmp.lt.s32.totalorder %s594_s15, 2 }
  0x16   : > { %s386_s7 = sshll.u32 %s149_s5, 3  ;;  %s387_s8 = sshll.u32 %s594_s15, 3 }
  0x17   : > { %s157_s11 = scalar_lea.hbm %s764_s0, %s387_s8  ;;  %s153_s17 = scalar_lea.vmem [#allocation2], %s386_s7 }
  0x18   : > { %s159_s16 = sshll.u32 %s157_s11, 4  ;;  %s161_s18 = sshll.u32 %s153_s17, 4  ;;  %s160_s16 = int_to_ptr.hbm [resolvable:$true] %s159_s16  ;;  %s162_s18 = int_to_ptr.vmem [resolvable:$true] %s161_s18 }
  0x19   : > { %p695_p8 = pnand %p418_p6, %p36_p2  ;;  %s150_s22 = scalar_lea.sflag [#allocation3], %s149_s5 }
  0x1a   : > { %s494_s23 = sshra.s32 %s160_s16, 4  ;;  %s501_s28 = scalar_lea.hbm %s764_s0, 16  ;;  %s495_s23 = int_to_ptr.hbm [resolvable:$true] %s494_s23 }
  0x1b   : > { %s496_s24 = scalar_lea.hbm %s495_s23, 8  ;;  %p498_p9 = pneg %p695_p8 }
  0x1c   : > { %p497_p7 = scmp.ne.s32.totalorder %s495_s23, %s496_s24  ;;  %p502_p0 = scmp.lt.s32.totalorder %s495_s23, %s764_s0 }
  0x1d   : > { %p503_p2 = scmp.lt.s32.totalorder %s501_s28, %s496_s24 }
  0x1e   : > { %p499_p10 = pnand %p498_p9, %p497_p7 }
  0x1f   : > { %p504_p6 = por %p503_p2, %p502_p0 }
  0x20   : > { %p500_p11 = pneg %p499_p10 }
  0x22   : > { %p505_p5 = pnand %p504_p6, %p500_p11 }
  0x24   : > { %508 = shalt.err (!%p505_p5)
}
  0x25   : > { %412 = dma.hbm_to_vmem [thread:$0]  (!%p695_p8), %s160_s16, 128, %s162_s18, %s150_s22  }
  0x26   : > { %170 = sbr.rel (%p650_p3) target bundleno = 572 (0x23c), region = 32  ;;  %s712_s5 = sand.u32 (!%p650_p3), 1, %s586_s13  }
  0x27   : > { %s389_s9 = sshll.u32 (!%p650_p3), %s712_s5, 3  ;;  %s173_s10 = scalar_lea.sflag (!%p650_p3), [#allocation3], %s712_s5 }
  0x28   : > { %s176_s11 = scalar_lea.vmem (!%p650_p3), [#allocation2], %s389_s9 }
  0x2b   : > { %569 = dma.done.wait (%p677_p12), %s173_s10, 128  }
  0x2c   : > { %571 = vsyncadd (%p677_p12), %s173_s10, 4294967168 }
  0x2d   : > { %573 = dma.done.wait (%p41_p1), [#allocation6], 512  }
  0x2e   : > { %575 = vsyncadd (%p41_p1), [#allocation6], 4294966784  ;;  %v209_v0 = vld [vmem:[#allocation5 + $0x18] sm:$0xff]  ;;  %v208_v1 = vld [vmem:[#allocation5 + $0x10] sm:$0xff]  ;;  %vm214_vm0 = vcmask 261120   ;;  %v599_v5 = vmov 1.0  }
  0x2f   : > { %230 = vmatpush.msra.mxu0 %v209_v0  ;;  %v207_v2 = vld [vmem:[#allocation5 + $0x8] sm:$0xff]  ;;  %v206_v3 = vld [vmem:[#allocation5] sm:$0xff]  ;;  %v205_v4 = vld [vmem:[%s176_s11] sm:$0xff]  ;;  %243 = vmatpush.msra.mxu1 %v599_v5  ;;  %v600_v13 = vmov 0   ;;  %s394_s16 = sshll.u32 %s645_s19, 3  ;;  %s204_s22 = scalar_lea.vmem [#allocation7], %s389_s9 }
  0x30   : > { %v459_v6 = vld [vmem:[%s766_s2] ss:$0 sm:$0xff]  ;;  %458 = vset.pattern.permute.xlu0 %v600_v13  ;;  %s297_s21 = scalar_lea.hbm %s767_s3, %s394_s16  ;;  %s299_s23 = sshll.u32 %s204_s22, 4  ;;  %vm284_vm5 = vcmask 982016   ;;  %s300_s23 = int_to_ptr.vmem [resolvable:$true] %s299_s23 }
  0x31   : > { %231 = vmatpush.msra.mxu0 %v208_v1  ;;  %244 = vmatpush.msra.mxu1 %v599_v5  ;;  %s301_s24 = sshll.u32 %s297_s21, 4  ;;  %s287_s25 = scalar_lea.sflag [#allocation4], %s712_s5  ;;  %s302_s24 = int_to_ptr.hbm [resolvable:$true] %s301_s24 }
  0x32   : > { %s538_s27 = sshra.s32 %s302_s24, 4  ;;  %s544_s8 = scalar_lea.hbm %s767_s3, 16  ;;  %s539_s27 = int_to_ptr.hbm [resolvable:$true] %s538_s27 }
  0x33   : > { %232 = vmatpush.msra.mxu0 %v207_v2  ;;  %245 = vmatpush.msra.mxu1 %v599_v5  ;;  %s540_s28 = scalar_lea.hbm %s539_s27, 8  ;;  %p545_p12 = scmp.lt.s32.totalorder %s539_s27, %s767_s3 }
  0x34   : > { %p541_p1 = scmp.ne.s32.totalorder %s539_s27, %s540_s28  ;;  %p546_p8 = scmp.lt.s32.totalorder %s544_s8, %s540_s28 }
  0x35   : > { %233 = vmatpush.msra.mxu0 %v206_v3  ;;  %246 = vmatpush.msra.mxu1 %v599_v5 }
  0x36   : > { %392 = vmatmul.msk.f32.vlgmr.msra.gmra.mxu0 %vm214_vm0, %v205_v4  ;;  %p542_p3 = pnand %p541_p1, %p681_p13  ;;  %p547_p7 = por %p546_p8, %p545_p12 }
  0x37   : > { %247 = vmatpush.msra.mxu1 %v599_v5 }
  0x38   : > { %p543_p5 = pneg %p542_p3 }
  0x39   : > { %248 = vmatpush.msra.mxu1 %v599_v5 }
  0x3a   : > { %p548_p9 = pnand %p547_p7, %p543_p5 }
  0x3b   : > { %249 = vmatpush.msra.mxu1 %v599_v5 }
  0x3d   : > { %250 = vmatpush.msra.mxu1 %v599_v5 }
  0x3f   : > { %251 = vmatpush.msra.mxu1 %v599_v5 }
  0x41   : > { %252 = vmatpush.msra.mxu1 %v599_v5 }
  0x43   : > { %253 = vmatpush.msra.mxu1 %v599_v5 }
  0x45   : > { %254 = vmatpush.msra.mxu1 %v599_v5 }
  0x47   : > { %255 = vmatpush.msra.mxu1 %v599_v5 }
  0x49   : > { %256 = vmatpush.msra.mxu1 %v599_v5 }
  0x4b   : > { %257 = vmatpush.msra.mxu1 %v599_v5 }
  0x4d   : > { %258 = vmatpush.msra.mxu1 %v599_v5 }
  0xb3   : > { %v235_v7 = vpop.f32.mrf.mxu0 }
  0xb4   : > { %v236_v8 = vadd.f32 %v459_v6, %v235_v7 }
  0xb6   : > { %238 = vmax.xlane.f32.xlu0 %v236_v8 }
 0x129   : > { %v239_v9 = vpop.xlane.xlu0 %238 }
 0x12a   : > { %v240_v10 = vsub.f32 %v236_v8, %v239_v9 }
 0x12c   : > { %v241_v11 = vmul.f32 1.442695, %v240_v10 }
 0x12e   : > { %460 = vpow2.f32 %v241_v11 }
 0x134   : > { %v461_v12 = vpop.eup %460 }
 0x135   : > { %259 = vmatmul.f32.vlgmr.msra.gmra.mxu1 %v461_v12 }
 0x1b2   : > { %v260_v14 = vpop.f32.mrf.mxu1 }
 0x1b3   : > { %462 = vrcp.f32 %v260_v14  ;;  %v274_v18 = vand.u32 2147483648, %v260_v14  ;;  %v272_v20 = vand.u32 2147483647, %v260_v14  ;;  %vm268_vm2 = vweird.f32 %v260_v14 }
 0x1b5   : > { %v275_v22 = vor.u32 1.1754944e-38, %v274_v18  ;;  %vm273_vm4 = vcmp.eq.f32.partialorder %v272_v20, 8.507059e+37 }
 0x1b9   : > { %v463_v15 = vpop.eup %462 }
 0x1ba   : > { %v264_v16 = vmul.f32 %v463_v15, %v260_v14  ;;  %vm269_vm1 = vweird.f32 %v463_v15 }
 0x1bb   : > { %vm270_vm3 = vmor %vm268_vm2, %vm269_vm1 }
 0x1bc   : > { %v265_v17 = vsub.f32 1.0, %v264_v16 }
 0x1be   : > { %v266_v19 = vmul.f32 %v463_v15, %v265_v17 }
 0x1c0   : > { %v267_v21 = vadd.f32 %v463_v15, %v266_v19 }
 0x1c2   : > { %v271_v23 = vsel %vm270_vm3, %v463_v15, %v267_v21 }
 0x1c3   : > { %v276_v24 = vsel %vm273_vm4, %v275_v22, %v271_v23 }
 0x1c4   : > { %280 = vperm.xlu0 %458, %v276_v24  }
 0x236   : > { %v281_v25 = vpop.permute.xlu0 %280 }
 0x237   : > { %v283_v26 = vmul.f32 %v461_v12, %v281_v25 }
 0x239   : > { %285 = vst.msk [vmem:[%s204_s22] sm:$0xff] %vm284_vm5, %v283_v26 }
 0x23a   : > { %551 = shalt.err (!%p548_p9)
}
 0x23b   : > { %403 = dma.vmem_to_hbm [thread:$0]  (%p681_p13), %s300_s23, 128, %s302_s24, %s287_s25  }
 0x23c PF: > { %s313_s5 = sand.u32 1, %s582_s12   ;;  %p773_p10 = scmp.ge.s32.totalorder %s594_s15, 2 }
 0x23d   : > { %s314_s11 = scalar_lea.sflag [#allocation4], %s313_s5 }
 0x23e   : > { %p414_p11 = pnand %p773_p10, %p686_p4 }
 0x240   : > { %p415_p0 = pneg %p414_p11 }
 0x242   : > { %577 = dma.done.wait (%p415_p0), %s314_s11, 128  }
 0x243   : > { %579 = vsyncadd (%p415_p0), %s314_s11, 4294967168  ;;  %p17_p2 = scmp.ge.s32.totalorder %s661_s26, 4   ;;  %s774_s12 = smov %s586_s13 }
 0x244   : > { %s775_s13 = smov %s590_s14  ;;  %s776_s14 = smov %s673_s29 }
 0x245   : > { %s777_s15 = smov %s661_s26  ;;  %19 = sbr.rel (!%p17_p2) target bundleno = 6 (0x6), region = 81 }
 0x24a   :  { %320 = vsyncpa [#allocation3], 1 }
 0x24b   :  { %322 = vsyncpa [#allocation3 + $0x1], 1 }
 0x24c   :  { %323 = vsyncpa [#allocation6], 1 }
 0x24d   :  { %324 = vsyncpa [#allocation4], 1 }
 0x24e   :  { %326 = vsyncpa [#allocation4 + $0x1], 1 }

</bundles_post_ra>
